<compile_context>
chip_gen: v7x
topology: tpu7x:2x2x1
jax: 0.10.0
libtpu: 0.0.40
codegen_flags: <defaults>
</compile_context>

<pallas_src>
import functools

import jax
import jax.numpy as jnp
from jax.experimental import pallas as pl
from jax.experimental.pallas import tpu as pltpu


# ---------------------------------------------------------------------------
# Small helpers
# ---------------------------------------------------------------------------

_VMEM_LIMIT = 40 * 1024 * 1024      # fits v5e/v6e (128 MiB) and v7x (64 MiB/TC)


def _round_up(x, m):
    return (x + m - 1) // m * m


def _pick_tile(n, cap, align):
    """Largest tile <= cap that divides n (n must be a multiple of align)."""
    t = min(cap, n)
    t -= t % align
    while t > align and n % t:
        t -= align
    return max(t, align)


# ---------------------------------------------------------------------------
# Pallas kernels
# ---------------------------------------------------------------------------

def _matmul_bn_act_kernel(x_ref, w_ref, s_ref, b_ref, *rest, apply_relu,
                          has_residual):
    """Tiled bf16 matmul, f32 accumulation, fused scale/bias(+res)(+ReLU)."""
    if has_residual:
        r_ref, o_ref, acc_ref = rest
    else:
        o_ref, acc_ref = rest

    k = pl.program_id(2)

    @pl.when(k == 0)
    def _():
        acc_ref[...] = jnp.zeros_like(acc_ref)

    acc_ref[...] += jnp.dot(x_ref[...], w_ref[...],
                            preferred_element_type=jnp.float32)

    @pl.when(k == pl.num_programs(2) - 1)
    def _():
        y = acc_ref[...] * s_ref[...] + b_ref[...]
        if has_residual:
            y = y + r_ref[...].astype(jnp.float32)
        if apply_relu:
            y = jnp.maximum(y, 0.0)
        o_ref[...] = y.astype(o_ref.dtype)


def _conv3x3_s1_kernel(x_ref, w_ref, s_ref, b_ref, o_ref, acc_ref, *,
                       Ho, Wo, apply_relu):
    """Direct 3x3 / stride-1 / pad-1 conv on one image (no HBM im2col).

    x_ref: (1, Ho+2, Wo+2, C) padded activation window.
    w_ref: (9, C, Np) per-tap weights.  o_ref: (1, Ho*Wo, Np).
    """
    acc_ref[...] = jnp.zeros_like(acc_ref)
    for t in range(9):
        i, j = divmod(t, 3)
        lhs = x_ref[0, i:i + Ho, j:j + Wo, :].reshape(Ho * Wo, -1)
        acc_ref[...] += jnp.dot(lhs, w_ref[t],
                                preferred_element_type=jnp.float32)
    y = acc_ref[...] * s_ref[...] + b_ref[...]
    if apply_relu:
        y = jnp.maximum(y, 0.0)
    o_ref[0] = y.astype(o_ref.dtype)


def _maxpool_kernel(p_ref, o_ref):
    # p_ref: (9, TM, C) -- tap axis leading (not sublane-tiled); reduce in f32.
    p = p_ref[...].astype(jnp.float32)
    o_ref[...] = jnp.max(p, axis=0).astype(o_ref.dtype)


# ---------------------------------------------------------------------------
# Cached pallas_call builders (one compile per unique shape/tiling)
# ---------------------------------------------------------------------------

@functools.lru_cache(maxsize=None)
def _get_matmul_call(Mp, Kp, Np, TM, TK, TN, apply_relu, has_residual,
                     out_dtype_name):
    out_dtype = jnp.dtype(out_dtype_name)
    grid = (Mp // TM, Np // TN, Kp // TK)
    kernel = functools.partial(_matmul_bn_act_kernel, apply_relu=apply_relu,
                               has_residual=has_residual)
    in_specs = [
        pl.BlockSpec((TM, TK), lambda i, j, k: (i, k)),
        pl.BlockSpec((TK, TN), lambda i, j, k: (k, j)),
        pl.BlockSpec((1, TN), lambda i, j, k: (0, j)),
        pl.BlockSpec((1, TN), lambda i, j, k: (0, j)),
    ]
    if has_residual:
        in_specs.append(pl.BlockSpec((TM, TN), lambda i, j, k: (i, j)))
    return pl.pallas_call(
        kernel,
        out_shape=jax.ShapeDtypeStruct((Mp, Np), out_dtype),
        grid_spec=pltpu.PrefetchScalarGridSpec(
            num_scalar_prefetch=0,
            grid=grid,
            in_specs=in_specs,
            out_specs=pl.BlockSpec((TM, TN), lambda i, j, k: (i, j)),
            scratch_shapes=[pltpu.VMEM((TM, TN), jnp.float32)],
        ),
        compiler_params=pltpu.CompilerParams(
            dimension_semantics=("parallel", "parallel", "arbitrary"),
            vmem_limit_bytes=_VMEM_LIMIT),
    )


@functools.lru_cache(maxsize=None)
def _get_conv3x3_call(B, Hp, Wp, C, Np, Ho, Wo, apply_relu):
    Mrows = Ho * Wo
    kernel = functools.partial(_conv3x3_s1_kernel, Ho=Ho, Wo=Wo,
                               apply_relu=apply_relu)
    return pl.pallas_call(
        kernel,
        out_shape=jax.ShapeDtypeStruct((B, Mrows, Np), jnp.bfloat16),
        grid_spec=pltpu.PrefetchScalarGridSpec(
            num_scalar_prefetch=0,
            grid=(B,),
            in_specs=[
                pl.BlockSpec((1, Hp, Wp, C), lambda b: (b, 0, 0, 0)),
                pl.BlockSpec((9, C, Np), lambda b: (0, 0, 0)),
                pl.BlockSpec((1, Np), lambda b: (0, 0)),
                pl.BlockSpec((1, Np), lambda b: (0, 0)),
            ],
            out_specs=pl.BlockSpec((1, Mrows, Np), lambda b: (b, 0, 0)),
            scratch_shapes=[pltpu.VMEM((Mrows, Np), jnp.float32)],
        ),
        compiler_params=pltpu.CompilerParams(
            dimension_semantics=("parallel",),
            vmem_limit_bytes=_VMEM_LIMIT),
    )


@functools.lru_cache(maxsize=None)
def _get_maxpool_call(Mp, C, TM):
    grid = (Mp // TM,)
    return pl.pallas_call(
        _maxpool_kernel,
        out_shape=jax.ShapeDtypeStruct((Mp, C), jnp.bfloat16),
        grid_spec=pltpu.PrefetchScalarGridSpec(
            num_scalar_prefetch=0,
            grid=grid,
            in_specs=[pl.BlockSpec((9, TM, C), lambda i: (0, i, 0))],
            out_specs=pl.BlockSpec((TM, C), lambda i: (i, 0)),
        ),
        compiler_params=pltpu.CompilerParams(
            dimension_semantics=("parallel",)),
    )


# ---------------------------------------------------------------------------
# Kernel wrappers
# ---------------------------------------------------------------------------

def matmul_bn_act(x, w_pad, s_pad, b_pad, *, n_valid, relu, out_dtype,
                  residual=None):
    """y = act((x @ w) * scale + bias [+ residual]).

    x: (M, K); w_pad: (Kp, Np) bf16 pre-padded; s_pad/b_pad: (1, Np) f32;
    residual: optional (M, n_valid).  Returns (M, n_valid) in out_dtype.
    """
    M, K = x.shape
    Kp, Np = w_pad.shape
    x = x.astype(jnp.bfloat16)

    TM = min(512, _round_up(M, 16))          # bf16 sublane tile is 16
    Mp = _round_up(M, TM)
    TK = _pick_tile(Kp, 512, 128)
    TN = _pick_tile(Np, 1024, 128)

    if Mp != M or Kp != K:
        x = jnp.pad(x, ((0, Mp - M), (0, Kp - K)))

    args = [x, w_pad, s_pad, b_pad]
    has_res = residual is not None
    if has_res:
        r = residual.astype(jnp.bfloat16)
        rM, rN = r.shape
        if Mp != rM or Np != rN:
            r = jnp.pad(r, ((0, Mp - rM), (0, Np - rN)))
        args.append(r)

    out = _get_matmul_call(Mp, Kp, Np, TM, TK, TN, bool(relu), has_res,
                           jnp.dtype(out_dtype).name)(*args)
    if Mp != M or Np != n_valid:
        out = out[:M, :n_valid]
    return out


def maxpool3x3_s2_p1(x):
    """nn.MaxPool2d(kernel_size=3, stride=2, padding=1), NHWC bf16."""
    B, H, W, C = x.shape
    Ho = (H + 2 - 3) // 2 + 1
    Wo = (W + 2 - 3) // 2 + 1
    xp = jnp.pad(x, ((0, 0), (1, 1), (1, 1), (0, 0)),
                 constant_values=-jnp.inf)
    # TODO(synk): the 9-tap stack still materializes 9x the stem activation in
    #             HBM; a direct windowed kernel would stream it once.
    taps = [xp[:, i:i + 2 * Ho:2, j:j + 2 * Wo:2, :]
            for i in range(3) for j in range(3)]
    M = B * Ho * Wo
    patches = jnp.stack(taps, axis=0).reshape(9, M, C)
    # Fold row pairs into the lane dim so the output store is 128-lane dense.
    fold = 1
    if C < 128 and 128 % C == 0 and M % (128 // C) == 0:
        fold = 128 // C
    M2, C2 = M // fold, C * fold
    patches = patches.reshape(9, M2, C2)
    TM = min(512, _round_up(M2, 16))
    Mp = _round_up(M2, TM)
    if Mp != M2:
        patches = jnp.pad(patches, ((0, 0), (0, Mp - M2), (0, 0)))
    out = _get_maxpool_call(Mp, C2, TM)(patches)
    if Mp != M2:
        out = out[:M2]
    return out.reshape(B, Ho, Wo, C)


# ---------------------------------------------------------------------------
# Conv (direct 3x3/s1 path, im2col + Pallas matmul otherwise)
# ---------------------------------------------------------------------------

_DIRECT_OK = set()
_DIRECT_FAILED = set()


def _try_conv3x3_direct(x, prep):
    """Direct (no HBM im2col) 3x3/s1/p1 conv; returns None on lowering failure."""
    B, H, W, C = x.shape
    Np = prep["w9"].shape[2]
    sig = (B, H, W, C, Np, bool(prep["relu"]))
    if sig in _DIRECT_FAILED:
        return None
    try:
        xp = jnp.pad(x.astype(jnp.bfloat16), ((0, 0), (1, 1), (1, 1), (0, 0)))
        call = _get_conv3x3_call(B, H + 2, W + 2, C, Np, H, W,
                                 bool(prep["relu"]))
        out = call(xp, prep["w9"], prep["s"], prep["b"])
        if sig not in _DIRECT_OK:
            out = jax.block_until_ready(out)   # surface any compile failure here
            _DIRECT_OK.add(sig)
    except Exception:
        _DIRECT_FAILED.add(sig)
        return None
    if Np != prep["N"]:
        out = out[:, :, :prep["N"]]
    return out.reshape(B, H, W, prep["N"])


def _im2col(x, kh, kw, stride, pad):
    B, H, W, C = x.shape
    xp = jnp.pad(x, ((0, 0), (pad, pad), (pad, pad), (0, 0))) if pad else x
    Ho = (H + 2 * pad - kh) // stride + 1
    Wo = (W + 2 * pad - kw) // stride + 1
    cols = [xp[:, i:i + stride * Ho:stride, j:j + stride * Wo:stride, :]
            for i in range(kh) for j in range(kw)]
    return jnp.concatenate(cols, axis=-1), Ho, Wo      # (B,Ho,Wo, kh*kw*C)


def conv_bn_act(x, prep, residual=None):
    """Conv2d (no bias) with folded BN scale/bias, optional fused residual+ReLU."""
    kh, kw, cin = prep["kh"], prep["kw"], prep["cin"]
    stride, pad = prep["stride"], prep["pad"]
    B = x.shape[0]
    relu = prep["relu"] or (residual is not None)

    if residual is None and prep.get("w9") is not None and stride == 1:
        out = _try_conv3x3_direct(x, prep)
        if out is not None:
            return out

    if kh == 1 and kw == 1 and pad == 0:
        if stride > 1:
            x = x[:, ::stride, ::stride, :]
        _, Ho, Wo, _ = x.shape
        cols = x.reshape(B * Ho * Wo, cin)
    else:
        cols, Ho, Wo = _im2col(x, kh, kw, stride, pad)
        cols = cols.reshape(B * Ho * Wo, kh * kw * cin)

    res2 = None
    if residual is not None:
        res2 = residual.reshape(B * Ho * Wo, prep["N"])

    y = matmul_bn_act(cols, prep["w"], prep["s"], prep["b"],
                      n_valid=prep["N"], relu=relu,
                      out_dtype=jnp.bfloat16, residual=res2)
    return y.reshape(B, Ho, Wo, prep["N"])


# ---------------------------------------------------------------------------
# Deterministic parameter construction (synthetic ResNet-50), pre-packed
# ---------------------------------------------------------------------------

class _KeyGen:
    def __init__(self, seed):
        self._key = jax.random.PRNGKey(seed)

    def __call__(self):
        self._key, sub = jax.random.split(self._key)
        return sub


def _conv_init(key, kh, kw, cin, cout):
    fan_in = kh * kw * cin
    return (jax.random.normal(key, (kh, kw, cin, cout), jnp.float32)
            * jnp.sqrt(2.0 / fan_in))


def _bn_init(key, c, eps=1e-5):
    k1, k2, k3, k4 = jax.random.split(key, 4)
    gamma = jax.random.uniform(k1, (c,), minval=0.8, maxval=1.2)
    beta = jax.random.normal(k2, (c,)) * 0.05
    mean = jax.random.normal(k3, (c,)) * 0.05
    var = jax.random.uniform(k4, (c,), minval=0.8, maxval=1.2)
    scale = gamma / jnp.sqrt(var + eps)
    bias = beta - mean * scale
    return scale.astype(jnp.float32), bias.astype(jnp.float32)


def _prep_conv(w, bn, *, stride, pad, relu):
    """Reshape/pad/cast conv weights + folded BN once, outside the forward."""
    scale, bias = bn
    kh, kw, cin, cout = w.shape
    K, N = kh * kw * cin, cout
    # Pad K so the matmul keeps TK=512 (instead of collapsing to 128).
    Kp = _round_up(K, 512) if K > 256 else _round_up(K, 128)
    Np = _round_up(N, 128)
    wm = jnp.pad(w.reshape(K, N), ((0, Kp - K), (0, Np - N))).astype(jnp.bfloat16)
    s = jnp.pad(scale.reshape(1, N), ((0, 0), (0, Np - N)))
    b = jnp.pad(bias.reshape(1, N), ((0, 0), (0, Np - N)))
    p = dict(w=wm, s=s, b=b, kh=kh, kw=kw, cin=cin, N=N,
             stride=stride, pad=pad, relu=relu, w9=None)
    if kh == 3 and kw == 3 and stride == 1 and pad == 1 and cin >= 16:
        # Per-tap weights for the direct (no-im2col) 3x3/s1 conv kernel.
        p["w9"] = jnp.pad(w.reshape(9, cin, N),
                          ((0, 0), (0, 0), (0, Np - N))).astype(jnp.bfloat16)
    return p


def build_params(seed=1, num_classes=10):
    kg = _KeyGen(seed)
    params = {}
    # Modified stem: Conv2d(1, 64, kernel_size=3, stride=1, padding=1, bias=False)
    params["stem"] = _prep_conv(_conv_init(kg(), 3, 3, 1, 64), _bn_init(kg(), 64),
                                stride=1, pad=1, relu=True)

    blocks = []
    cin = 64
    for planes, nblocks, stride in [(64, 3, 1), (128, 4, 2),
                                    (256, 6, 2), (512, 3, 2)]:
        for bidx in range(nblocks):
            s = stride if bidx == 0 else 1
            p = {}
            p["conv1"] = _prep_conv(_conv_init(kg(), 1, 1, cin, planes),
                                    _bn_init(kg(), planes),
                                    stride=1, pad=0, relu=True)
            p["conv2"] = _prep_conv(_conv_init(kg(), 3, 3, planes, planes),
                                    _bn_init(kg(), planes),
                                    stride=s, pad=1, relu=True)
            p["conv3"] = _prep_conv(_conv_init(kg(), 1, 1, planes, planes * 4),
                                    _bn_init(kg(), planes * 4),
                                    stride=1, pad=0, relu=False)
            if s != 1 or cin != planes * 4:
                p["down"] = _prep_conv(_conv_init(kg(), 1, 1, cin, planes * 4),
                                       _bn_init(kg(), planes * 4),
                                       stride=s, pad=0, relu=False)
            cin = planes * 4
            blocks.append(p)
    params["blocks"] = blocks

    # Modified head: Linear(2048, num_classes)
    fc_w = (jax.random.normal(kg(), (2048, num_classes), jnp.float32)
            / jnp.sqrt(2048.0))
    fc_b = jax.random.normal(kg(), (num_classes,)) * 0.01
    Np = _round_up(num_classes, 128)
    params["fc"] = dict(
        w=jnp.pad(fc_w, ((0, 0), (0, Np - num_classes))).astype(jnp.bfloat16),
        s=jnp.pad(jnp.ones((1, num_classes), jnp.float32),
                  ((0, 0), (0, Np - num_classes))),
        b=jnp.pad(fc_b.reshape(1, num_classes).astype(jnp.float32),
                  ((0, 0), (0, Np - num_classes))),
        N=num_classes)
    return params


# ---------------------------------------------------------------------------
# Forward pass
# ---------------------------------------------------------------------------

def _bottleneck(x, p):
    identity = conv_bn_act(x, p["down"]) if "down" in p else x
    out = conv_bn_act(x, p["conv1"])
    out = conv_bn_act(out, p["conv2"])
    # conv3: BN scale/bias, residual add and ReLU all fused in the matmul epilogue.
    return conv_bn_act(out, p["conv3"], residual=identity)


def modified_resnet50_forward(x_nchw, params):
    """x_nchw: (B, 1, H, W) float32 -> logits (B, num_classes) float32."""
    x = jnp.transpose(x_nchw, (0, 2, 3, 1)).astype(jnp.bfloat16)   # -> NHWC bf16
    x = conv_bn_act(x, params["stem"])
    x = maxpool3x3_s2_p1(x)
    for p in params["blocks"]:
        x = _bottleneck(x, p)
    # Global average pool (plain-JAX glue, f32 accumulation).
    x = jnp.mean(x.astype(jnp.float32), axis=(1, 2))               # (B, 2048)
    fc = params["fc"]
    logits = matmul_bn_act(x, fc["w"], fc["s"], fc["b"],
                           n_valid=fc["N"], relu=False,
                           out_dtype=jnp.float32)
    return logits


# ---------------------------------------------------------------------------
# Demo
# ---------------------------------------------------------------------------

if __name__ == "__main__":
    B, C_IN, H, W = 2, 1, 16, 16          # modified stem expects 1 channel
    x = jax.random.normal(jax.random.PRNGKey(0), (B, C_IN, H, W), jnp.float32)

    params = build_params(seed=1, num_classes=10)

    logits = modified_resnet50_forward(x, params)
    logits = jax.block_until_ready(logits)

    assert logits.shape == (B, 10), logits.shape
    assert bool(jnp.all(jnp.isfinite(logits)))
    print("KERNEL_OK")
</pallas_src>

<mosaic_0001>
module attributes {stable_mosaic.version = 11 : i64} {
  func.func @_matmul_bn_act_kernel(%arg0: i32, %arg1: i32, %arg2: i32, %arg3: memref<512x128xbf16, #tpu.memory_space<vmem>>, %arg4: memref<128x128xbf16, #tpu.memory_space<vmem>>, %arg5: memref<1x128xf32, #tpu.memory_space<vmem>>, %arg6: memref<1x128xf32, #tpu.memory_space<vmem>>, %arg7: memref<512x128xbf16, #tpu.memory_space<vmem>>, %arg8: memref<512x128xf32, #tpu.memory_space<vmem>>) attributes {dimension_semantics = [#tpu.dimension_semantics<parallel>, #tpu.dimension_semantics<parallel>, #tpu.dimension_semantics<arbitrary>], iteration_bounds = array<i64: 1, 1, 1>, scalar_prefetch = 0 : i64, scratch_operands = 1 : i64, tpu.core_type = #tpu.core_type<tc>, window_params = [{transform_indices = @transform_0, window_bounds = array<i64: 512, 128>}, {transform_indices = @transform_1, window_bounds = array<i64: 128, 128>}, {transform_indices = @transform_2, window_bounds = array<i64: 1, 128>}, {transform_indices = @transform_3, window_bounds = array<i64: 1, 128>}, {transform_indices = @transform_4, window_bounds = array<i64: 512, 128>}]} {
    %c0_i32 = arith.constant 0 : i32
    %0 = arith.cmpi eq, %arg2, %c0_i32 : i32
    %1 = arith.extui %0 : i1 to i32
    %c0_i32_0 = arith.constant 0 : i32
    %2 = arith.cmpi ne, %1, %c0_i32_0 : i32
    scf.if %2 {
      %cst_10 = arith.constant 0.000000e+00 : f32
      %12 = vector.broadcast %cst_10 : f32 to vector<512x128xf32>
      %c0_11 = arith.constant 0 : index
      %c0_12 = arith.constant 0 : index
      %13 = vector.load %arg8[%c0_11, %c0_12] : memref<512x128xf32, #tpu.memory_space<vmem>>, vector<512x128xf32>
      tpu.vector_store %arg8[%c0_11, %c0_12], %12 {strides = array<i32>} : memref<512x128xf32, #tpu.memory_space<vmem>>, vector<512x128xf32>,
    } else {
    }
    %c0 = arith.constant 0 : index
    %c0_1 = arith.constant 0 : index
    %3 = vector.load %arg8[%c0, %c0_1] : memref<512x128xf32, #tpu.memory_space<vmem>>, vector<512x128xf32>
    %c0_2 = arith.constant 0 : index
    %c0_3 = arith.constant 0 : index
    %4 = vector.load %arg3[%c0_2, %c0_3] : memref<512x128xbf16, #tpu.memory_space<vmem>>, vector<512x128xbf16>
    %c0_4 = arith.constant 0 : index
    %c0_5 = arith.constant 0 : index
    %5 = vector.load %arg4[%c0_4, %c0_5] : memref<128x128xbf16, #tpu.memory_space<vmem>>, vector<128x128xbf16>
    %cst = arith.constant dense<0.000000e+00> : vector<512x128xf32>
    %6 = tpu.matmul %4, %5, %cst {dimension_numbers = #tpu.dot_dimension_numbers<[1], [0], [0], [1], [0, 0, 1, 1], [], []>} : vector<512x128xbf16>, vector<128x128xbf16>, vector<512x128xf32> -> vector<512x128xf32>
    %7 = arith.addf %3, %6 : vector<512x128xf32>
    %c0_6 = arith.constant 0 : index
    %c0_7 = arith.constant 0 : index
    %8 = vector.load %arg8[%c0_6, %c0_7] : memref<512x128xf32, #tpu.memory_space<vmem>>, vector<512x128xf32>
    tpu.vector_store %arg8[%c0_6, %c0_7], %7 {strides = array<i32>} : memref<512x128xf32, #tpu.memory_space<vmem>>, vector<512x128xf32>,
    %c0_i32_8 = arith.constant 0 : i32
    %9 = arith.cmpi eq, %arg2, %c0_i32_8 : i32
    %10 = arith.extui %9 : i1 to i32
    %c0_i32_9 = arith.constant 0 : i32
    %11 = arith.cmpi ne, %10, %c0_i32_9 : i32
    scf.if %11 {
      %c0_10 = arith.constant 0 : index
      %c0_11 = arith.constant 0 : index
      %12 = vector.load %arg8[%c0_10, %c0_11] : memref<512x128xf32, #tpu.memory_space<vmem>>, vector<512x128xf32>
      %c0_12 = arith.constant 0 : index
      %c0_13 = arith.constant 0 : index
      %13 = vector.load %arg5[%c0_12, %c0_13] : memref<1x128xf32, #tpu.memory_space<vmem>>, vector<1x128xf32>
      %14 = vector.broadcast %13 : vector<1x128xf32> to vector<512x128xf32>
      %15 = arith.mulf %12, %14 : vector<512x128xf32>
      %c0_14 = arith.constant 0 : index
      %c0_15 = arith.constant 0 : index
      %16 = vector.load %arg6[%c0_14, %c0_15] : memref<1x128xf32, #tpu.memory_space<vmem>>, vector<1x128xf32>
      %17 = vector.broadcast %16 : vector<1x128xf32> to vector<512x128xf32>
      %18 = arith.addf %15, %17 : vector<512x128xf32>
      %cst_16 = arith.constant 0.000000e+00 : f32
      %19 = vector.broadcast %cst_16 : f32 to vector<512x128xf32>
      %20 = arith.maximumf %18, %19 : vector<512x128xf32>
      %21 = arith.truncf %20 : vector<512x128xf32> to vector<512x128xbf16>
      %c0_17 = arith.constant 0 : index
      %c0_18 = arith.constant 0 : index
      %22 = vector.load %arg7[%c0_17, %c0_18] : memref<512x128xbf16, #tpu.memory_space<vmem>>, vector<512x128xbf16>
      tpu.vector_store %arg7[%c0_17, %c0_18], %21 {strides = array<i32>} : memref<512x128xbf16, #tpu.memory_space<vmem>>, vector<512x128xbf16>,
    } else {
    }
    return
  }
  func.func @transform_0(%arg0: i32, %arg1: i32, %arg2: i32) -> (i32, i32) {
    %c0_i32 = arith.constant 0 : i32
    return %arg0, %arg2 : i32, i32
  }
  func.func @transform_1(%arg0: i32, %arg1: i32, %arg2: i32) -> (i32, i32) {
    %c0_i32 = arith.constant 0 : i32
    return %arg2, %arg1 : i32, i32
  }
  func.func @transform_2(%arg0: i32, %arg1: i32, %arg2: i32) -> (i32, i32) {
    %c0_i32 = arith.constant 0 : i32
    %c0_i32_0 = arith.constant 0 : i32
    return %c0_i32, %arg1 : i32, i32
  }
  func.func @transform_3(%arg0: i32, %arg1: i32, %arg2: i32) -> (i32, i32) {
    %c0_i32 = arith.constant 0 : i32
    %c0_i32_0 = arith.constant 0 : i32
    return %c0_i32, %arg1 : i32, i32
  }
  func.func @transform_4(%arg0: i32, %arg1: i32, %arg2: i32) -> (i32, i32) {
    %c0_i32 = arith.constant 0 : i32
    return %arg0, %arg1 : i32, i32
  }
}

</mosaic_0001>

<bundles_post_ra>
// kernel: tpu_custom_call.1
= control target key start
LH: loop header
LB: loop body
LE: loop exit
PB: predicated region body
PF: predicated region fallthrough
CT: control target
= control target key end

     0   :  { %9 = vsyncpa [#allocation4], 0  ;;  %s2354_s0 = inlined_call_operand.hbm [shape: bf16[512,128], index: 0, kind: input, shape index: {}]   ;;  %s2355_s1 = inlined_call_operand.hbm [shape: bf16[128,128], index: 1, kind: input, shape index: {}]   ;;  %s2356_s2 = inlined_call_operand.vmem [shape: f32[1,128], index: 2, kind: input, shape index: {}]   ;;  %s2357_s3 = inlined_call_operand.vmem [shape: f32[1,128], index: 3, kind: input, shape index: {}]   ;;  %s2358_s4 = inlined_call_operand.hbm [shape: bf16[512,128], index: 4, kind: output, shape index: {}]  }
   0x1   :  { %10 = vsyncpa [#allocation7], 0 }
   0x2   :  { %11 = vsyncpa [#allocation5], 0  ;;  %s2141_s15 = smov [#allocation3]   ;;  %s2069_s19 = scalar_lea.hbm %s2354_s0, 4096 }
   0x3   :  { %s17_s16 = sshll.u32 %s2141_s15, 4  ;;  %p2070_p0 = scmp.ne.s32.totalorder %s2354_s0, %s2069_s19  ;;  %s18_s16 = int_to_ptr.vmem [resolvable:$true] %s17_s16 }
   0x4   :  { %p2073_p1 = scmp.lt.u32.totalorder %s2069_s19, %s2354_s0 }
   0x6   :  { %p2075_p2 = pnand %p2073_p1, %p2070_p0 }
   0x8   :  { %2078 = shalt.err (!%p2075_p2)
}
   0x9   :  { %s2079_s24 = scalar_lea.vmem %s18_s16, 4096  ;;  %p2084_p4 = scmp.lt.s32.totalorder %s18_s16, %s18_s16 }
   0xa   :  { %p2080_p3 = scmp.ne.s32.totalorder %s18_s16, %s2079_s24  ;;  %p2085_p5 = scmp.lt.s32.totalorder %s2079_s24, %s2079_s24 }
   0xc   :  { %p2086_p6 = por %p2085_p5, %p2084_p4 }
   0xe   :  { %p2087_p7 = pnand %p2086_p6, %p2080_p3 }
  0x10   :  { %2090 = shalt.err (!%p2087_p7)
}
  0x11   :  { %s2142_s25 = smov 64   ;;  %s2143_s26 = smov 4  }
  0x12   :  { %23 = dma.hbm_to_vmem [thread:$0]  %s2354_s0, 4096, %s18_s16, [#allocation4], %s2142_s25, %s2142_s25, %s2143_s26  }
  0x13   :  { %s2144_s29 = smov [#allocation6]   ;;  %s2091_s7 = scalar_lea.hbm %s2355_s1, 1024 }
  0x14   :  { %s29_s30 = sshll.u32 %s2144_s29, 4  ;;  %p2092_p8 = scmp.ne.s32.totalorder %s2355_s1, %s2091_s7  ;;  %s30_s30 = int_to_ptr.vmem [resolvable:$true] %s29_s30 }
  0x15   :  { %p2095_p9 = scmp.lt.u32.totalorder %s2091_s7, %s2355_s1 }
  0x17   :  { %p2097_p10 = pnand %p2095_p9, %p2092_p8 }
  0x19   :  { %2100 = shalt.err (!%p2097_p10)
}
  0x1a   :  { %s2101_s12 = scalar_lea.vmem %s30_s30, 1024  ;;  %p2106_p12 = scmp.lt.s32.totalorder %s30_s30, %s30_s30 }
  0x1b   :  { %p2102_p11 = scmp.ne.s32.totalorder %s30_s30, %s2101_s12  ;;  %p2107_p13 = scmp.lt.s32.totalorder %s2101_s12, %s2101_s12 }
  0x1d   :  { %p2108_p0 = por %p2107_p13, %p2106_p12 }
  0x1f   :  { %p2109_p1 = pnand %p2108_p0, %p2102_p11 }
  0x21   :  { %2112 = shalt.err (!%p2109_p1)
}
  0x22   :  { %35 = dma.hbm_to_vmem [thread:$0]  %s2355_s1, 1024, %s30_s30, [#allocation7], %s2142_s25, %s2142_s25, %s2143_s26  }
  0x23   :  { %2135 = dma.done.wait [#allocation4], 4096  }
  0x24   :  { %2136 = vsyncadd [#allocation4], 4294963200 }
  0x25   :  { %2137 = dma.done.wait [#allocation7], 1024  }
  0x26   :  { %2138 = vsyncadd [#allocation7], 4294966272  ;;  %v2029_v0 = vld [vmem:[#allocation6] sm:$0xff]   ;;  %v2030_v1 = vld [vmem:[#allocation6 + $0x8] sm:$0xff]  }
  0x27   :  { %1928 = vmatprep.subr.bf16.mxu0 %v2029_v0  ;;  %2008 = vmatprep.subr.bf16.mxu1 %v2029_v0  ;;  %v2031_v2 = vld [vmem:[#allocation6 + $0x10] sm:$0xff]   ;;  %v2032_v3 = vld [vmem:[#allocation6 + $0x18] sm:$0xff]   ;;  %v2037_v4 = vld [vmem:[#allocation3] sm:$0xff]  }
  0x28   :  { %1929 = vmatpush3.bf16.msra.mxu0 %v2029_v0  ;;  %2016 = vmatpush3.bf16.msra.mxu1 %v2029_v0  ;;  %v2038_v5 = vld [vmem:[#allocation3 + $0x80] sm:$0xff]   ;;  %v2034_v7 = vld [vmem:[#allocation6 + $0x28] sm:$0xff]   ;;  %v2035_v8 = vld [vmem:[#allocation6 + $0x30] sm:$0xff]  }
  0x29   :  { %1930 = vmatprep.subr.bf16.mxu0 %v2030_v1  ;;  %2009 = vmatprep.subr.bf16.mxu1 %v2030_v1  ;;  %v2033_v6 = vld [vmem:[#allocation6 + $0x20] sm:$0xff]   ;;  %v2036_v9 = vld [vmem:[#allocation6 + $0x38] sm:$0xff]   ;;  %v2039_v10 = vld [vmem:[#allocation3 + $0x8] sm:$0xff]  }
  0x2a   :  { %1944 = vmatprep.mubr.bf16.mxu0 %v2037_v4  ;;  %1976 = vmatprep.mubr.bf16.mxu1 %v2038_v5  ;;  %v2040_v11 = vld [vmem:[#allocation3 + $0x88] sm:$0xff]   ;;  %v2041_v12 = vld [vmem:[#allocation3 + $0x10] sm:$0xff]   ;;  %v2043_v14 = vld [vmem:[#allocation3 + $0x18] sm:$0xff]  }
  0x2b   :  { %v2042_v13 = vld [vmem:[#allocation3 + $0x90] sm:$0xff]   ;;  %v2044_v15 = vld [vmem:[#allocation3 + $0x98] sm:$0xff]   ;;  %v2045_v16 = vld [vmem:[#allocation3 + $0x20] sm:$0xff]  }
  0x2c   :  { %1931 = vmatpush3.bf16.msra.mxu0 %v2030_v1  ;;  %2017 = vmatpush3.bf16.msra.mxu1 %v2030_v1  ;;  %v2046_v17 = vld [vmem:[#allocation3 + $0xa0] sm:$0xff]   ;;  %v2047_v18 = vld [vmem:[#allocation3 + $0x28] sm:$0xff]   ;;  %v2049_v20 = vld [vmem:[#allocation3 + $0x30] sm:$0xff]  }
  0x2d   :  { %1932 = vmatprep.subr.bf16.mxu0 %v2031_v2  ;;  %2010 = vmatprep.subr.bf16.mxu1 %v2031_v2  ;;  %v2048_v19 = vld [vmem:[#allocation3 + $0xa8] sm:$0xff]   ;;  %v2050_v21 = vld [vmem:[#allocation3 + $0xb0] sm:$0xff]   ;;  %v2051_v22 = vld [vmem:[#allocation3 + $0x38] sm:$0xff]  }
  0x2e   :  { %v2052_v23 = vld [vmem:[#allocation3 + $0xb8] sm:$0xff]   ;;  %v2053_v24 = vld [vmem:[#allocation3 + $0x40] sm:$0xff]   ;;  %v2055_v26 = vld [vmem:[#allocation3 + $0x48] sm:$0xff]  }
  0x2f   :  { %v2054_v25 = vld [vmem:[#allocation3 + $0xc0] sm:$0xff]   ;;  %v2056_v27 = vld [vmem:[#allocation3 + $0xc8] sm:$0xff]   ;;  %v2057_v28 = vld [vmem:[#allocation3 + $0x50] sm:$0xff]  }
  0x30   :  { %1933 = vmatpush3.bf16.msra.mxu0 %v2031_v2  ;;  %2018 = vmatpush3.bf16.msra.mxu1 %v2031_v2  ;;  %v2058_v29 = vld [vmem:[#allocation3 + $0xd0] sm:$0xff]   ;;  %v2059_v30 = vld [vmem:[#allocation3 + $0x58] sm:$0xff]   ;;  %v2061_v32 = vld [vmem:[#allocation3 + $0x60] sm:$0xff]  }
  0x31   :  { %1934 = vmatprep.subr.bf16.mxu0 %v2032_v3  ;;  %2011 = vmatprep.subr.bf16.mxu1 %v2032_v3  ;;  %v2060_v31 = vld [vmem:[#allocation3 + $0xd8] sm:$0xff]   ;;  %v2062_v33 = vld [vmem:[#allocation3 + $0xe0] sm:$0xff]   ;;  %v2063_v34 = vld [vmem:[#allocation3 + $0x68] sm:$0xff]  }
  0x32   :  { %v2064_v35 = vld [vmem:[#allocation3 + $0xe8] sm:$0xff]   ;;  %v2065_v36 = vld [vmem:[#allocation3 + $0x70] sm:$0xff]   ;;  %v2067_v38 = vld [vmem:[#allocation3 + $0x78] sm:$0xff]  }
  0x33   :  { %v2066_v37 = vld [vmem:[#allocation3 + $0xf0] sm:$0xff]   ;;  %v2068_v39 = vld [vmem:[#allocation3 + $0xf8] sm:$0xff]   ;;  %v2204_v40 = vld [vmem:[%s2356_s2] ss:$0 sm:$0xff]  ;;  %s2145_s2 = smov [#allocation8]  }
  0x34   :  { %1935 = vmatpush3.bf16.msra.mxu0 %v2032_v3  ;;  %2019 = vmatpush3.bf16.msra.mxu1 %v2032_v3  ;;  %v2209_v42 = vld [vmem:[%s2357_s3] ss:$0 sm:$0xff]  ;;  %s1514_s3 = sshll.u32 %s2145_s2, 4  ;;  %s1515_s3 = int_to_ptr.vmem [resolvable:$true] %s1514_s3 }
  0x35   :  { %1936 = vmatprep.subr.bf16.mxu0 %v2033_v6  ;;  %2012 = vmatprep.subr.bf16.mxu1 %v2033_v6  ;;  %s2113_s17 = scalar_lea.vmem %s1515_s3, 4096  ;;  %p2118_p3 = scmp.lt.s32.totalorder %s1515_s3, %s1515_s3 }
  0x36   :  { %p2114_p2 = scmp.ne.s32.totalorder %s1515_s3, %s2113_s17  ;;  %p2119_p4 = scmp.lt.s32.totalorder %s2113_s17, %s2113_s17 }
  0x38   :  { %1937 = vmatpush3.bf16.msra.mxu0 %v2033_v6  ;;  %2020 = vmatpush3.bf16.msra.mxu1 %v2033_v6  ;;  %p2120_p5 = por %p2119_p4, %p2118_p3 }
  0x39   :  { %1938 = vmatprep.subr.bf16.mxu0 %v2034_v7  ;;  %2013 = vmatprep.subr.bf16.mxu1 %v2034_v7 }
  0x3a   :  { %p2121_p6 = pnand %p2120_p5, %p2114_p2 }
  0x3c   :  { %1939 = vmatpush3.bf16.msra.mxu0 %v2034_v7  ;;  %2021 = vmatpush3.bf16.msra.mxu1 %v2034_v7 }
  0x3d   :  { %1940 = vmatprep.subr.bf16.mxu0 %v2035_v8  ;;  %2014 = vmatprep.subr.bf16.mxu1 %v2035_v8 }
  0x40   :  { %1941 = vmatpush3.bf16.msra.mxu0 %v2035_v8  ;;  %2022 = vmatpush3.bf16.msra.mxu1 %v2035_v8 }
  0x41   :  { %1942 = vmatprep.subr.bf16.mxu0 %v2036_v9  ;;  %2015 = vmatprep.subr.bf16.mxu1 %v2036_v9 }
  0x44   :  { %1943 = vmatpush3.bf16.msra.mxu0 %v2036_v9  ;;  %2023 = vmatpush3.bf16.msra.mxu1 %v2036_v9 }
  0x47   :  { %1945 = vmatmul.mubr.bf16.vlgmr.msra.gmra.mrb[0].mxu0 %v2039_v10  ;;  %1977 = vmatmul.mubr.bf16.vlgmr.msra.gmra.mrb[0].mxu1 %v2040_v11 }
  0x48   :  { %1948 = vmatprep.mubr.bf16.mxu0 %v2041_v12  ;;  %1980 = vmatprep.mubr.bf16.mxu1 %v2042_v13 }
  0x4f   :  { %1949 = vmatmul.mubr.bf16.gmra.mrb[4].mxu0 %v2043_v14  ;;  %1981 = vmatmul.mubr.bf16.gmra.mrb[4].mxu1 %v2044_v15 }
  0x50   :  { %1952 = vmatprep.mubr.bf16.mxu0 %v2045_v16  ;;  %1984 = vmatprep.mubr.bf16.mxu1 %v2046_v17 }
  0x57   :  { %1953 = vmatmul.mubr.bf16.gmra.mrb[8].mxu0 %v2047_v18  ;;  %1985 = vmatmul.mubr.bf16.gmra.mrb[8].mxu1 %v2048_v19 }
  0x58   :  { %1956 = vmatprep.mubr.bf16.mxu0 %v2049_v20  ;;  %1988 = vmatprep.mubr.bf16.mxu1 %v2050_v21 }
  0x5f   :  { %1957 = vmatmul.mubr.bf16.gmra.mrb[12].mxu0 %v2051_v22  ;;  %1989 = vmatmul.mubr.bf16.gmra.mrb[12].mxu1 %v2052_v23 }
  0x60   :  { %1960 = vmatprep.mubr.bf16.mxu0 %v2053_v24  ;;  %1992 = vmatprep.mubr.bf16.mxu1 %v2054_v25 }
  0x67   :  { %1961 = vmatmul.mubr.bf16.gmra.mrb[16].mxu0 %v2055_v26  ;;  %1993 = vmatmul.mubr.bf16.gmra.mrb[16].mxu1 %v2056_v27 }
  0x68   :  { %1964 = vmatprep.mubr.bf16.mxu0 %v2057_v28  ;;  %1996 = vmatprep.mubr.bf16.mxu1 %v2058_v29 }
  0x6f   :  { %1965 = vmatmul.mubr.bf16.gmra.mrb[20].mxu0 %v2059_v30  ;;  %1997 = vmatmul.mubr.bf16.gmra.mrb[20].mxu1 %v2060_v31 }
  0x70   :  { %1968 = vmatprep.mubr.bf16.mxu0 %v2061_v32  ;;  %2000 = vmatprep.mubr.bf16.mxu1 %v2062_v33 }
  0x77   :  { %1969 = vmatmul.mubr.bf16.gmra.mrb[24].mxu0 %v2063_v34  ;;  %2001 = vmatmul.mubr.bf16.gmra.mrb[24].mxu1 %v2064_v35 }
  0x78   :  { %1972 = vmatprep.mubr.bf16.mxu0 %v2065_v36  ;;  %2004 = vmatprep.mubr.bf16.mxu1 %v2066_v37 }
  0x7f   :  { %1973 = vmatmul.mubr.bf16.gmra.mrb[28].mxu0 %v2067_v38  ;;  %2005 = vmatmul.mubr.bf16.gmra.mrb[28].mxu1 %v2068_v39 }
 0x11a   :  { %v1946_v41 = vpop.f32.mrb[0].mxu0  ;;  %v1978_v43 = vpop.f32.mrb[0].mxu1 }
 0x11b   :  { %v992_v44 = vmul.f32 %v1946_v41, %v2204_v40  ;;  %v1024_v45 = vmul.f32 %v1978_v43, %v2204_v40  ;;  %v533_v46 = vpop.f32.mrb[1].mxu0  ;;  %v661_v47 = vpop.f32.mrb[1].mxu1 }
 0x11c   :  { %v990_v48 = vmul.f32 %v2204_v40, %v533_v46  ;;  %v1022_v49 = vmul.f32 %v2204_v40, %v661_v47  ;;  %v1947_v50 = vpop.f32.mrb[2].mxu0  ;;  %v1979_v51 = vpop.f32.mrb[2].mxu1 }
 0x11d   :  { %v1063_v52 = vadd.f32 %v2209_v42, %v992_v44  ;;  %v1095_v53 = vadd.f32 %v2209_v42, %v1024_v45  ;;  %v993_v54 = vmul.f32 %v1947_v50, %v2204_v40  ;;  %v1025_v55 = vmul.f32 %v1979_v51, %v2204_v40  ;;  %v536_v56 = vpop.f32.mrb[3].mxu0  ;;  %v664_v57 = vpop.f32.mrb[3].mxu1 }
 0x11e   :  { %v1061_v58 = vadd.f32 %v2209_v42, %v990_v48  ;;  %v1093_v59 = vadd.f32 %v2209_v42, %v1022_v49  ;;  %v991_v60 = vmul.f32 %v2204_v40, %v536_v56  ;;  %v1023_v61 = vmul.f32 %v2204_v40, %v664_v57 }
 0x11f   :  { %v1064_v62 = vadd.f32 %v2209_v42, %v993_v54  ;;  %v1096_v63 = vadd.f32 %v2209_v42, %v1025_v55  ;;  %v1127_v2 = vmax.f32 %v1063_v52, 0.0  ;;  %v1159_v3 = vmax.f32 %v1095_v53, 0.0 }
 0x120   :  { %v1062_v0 = vadd.f32 %v2209_v42, %v991_v60  ;;  %v1094_v1 = vadd.f32 %v2209_v42, %v1023_v61  ;;  %v1125_v6 = vmax.f32 %v1061_v58, 0.0  ;;  %v1157_v7 = vmax.f32 %v1093_v59, 0.0 }
 0x121   :  { %v1128_v4 = vmax.f32 %v1064_v62, 0.0  ;;  %v1160_v5 = vmax.f32 %v1096_v63, 0.0 }
 0x122   :  { %v1126_v8 = vmax.f32 %v1062_v0, 0.0  ;;  %v1158_v9 = vmax.f32 %v1094_v1, 0.0  ;;  %v1950_v10 = vpop.f32.mrb[4].mxu0  ;;  %v1982_v11 = vpop.f32.mrb[4].mxu1 }
 0x123   :  { %v1705_v12 = vpack.c.bf16 %v1128_v4, %v1127_v2  ;;  %v1785_v13 = vpack.c.bf16 %v1160_v5, %v1159_v3  ;;  %v996_v14 = vmul.f32 %v1950_v10, %v2204_v40  ;;  %v1028_v15 = vmul.f32 %v1982_v11, %v2204_v40  ;;  %v549_v16 = vpop.f32.mrb[5].mxu0  ;;  %v677_v17 = vpop.f32.mrb[5].mxu1 }
 0x124   :  { %v1700_v18 = vpack.c.bf16 %v1126_v8, %v1125_v6  ;;  %v1780_v19 = vpack.c.bf16 %v1158_v9, %v1157_v7  ;;  %v994_v20 = vmul.f32 %v2204_v40, %v549_v16  ;;  %v1026_v21 = vmul.f32 %v2204_v40, %v677_v17  ;;  %v1951_v22 = vpop.f32.mrb[6].mxu0  ;;  %v1983_v23 = vpop.f32.mrb[6].mxu1 }
 0x125   :  { %1857 = vst [vmem:[#allocation8 + $0x8] sm:$0xff] %v1705_v12   ;;  %1873 = vst [vmem:[#allocation8 + $0x88] sm:$0xff] %v1785_v13   ;;  %v1067_v24 = vadd.f32 %v2209_v42, %v996_v14  ;;  %v1099_v25 = vadd.f32 %v2209_v42, %v1028_v15  ;;  %v997_v26 = vmul.f32 %v1951_v22, %v2204_v40  ;;  %v552_v28 = vpop.f32.mrb[7].mxu0  ;;  %v680_v29 = vpop.f32.mrb[7].mxu1 }
 0x126   :  { %v1029_v27 = vmul.f32 %v1983_v23, %v2204_v40  ;;  %1701 = vst [vmem:[#allocation8] sm:$0xff] %v1700_v18   ;;  %1872 = vst [vmem:[#allocation8 + $0x80] sm:$0xff] %v1780_v19   ;;  %v1065_v30 = vadd.f32 %v2209_v42, %v994_v20  ;;  %v1097_v31 = vadd.f32 %v2209_v42, %v1026_v21 }
 0x127   :  { %v995_v32 = vmul.f32 %v2204_v40, %v552_v28  ;;  %v1027_v33 = vmul.f32 %v2204_v40, %v680_v29  ;;  %v1068_v34 = vadd.f32 %v2209_v42, %v997_v26  ;;  %v1131_v38 = vmax.f32 %v1067_v24, 0.0 }
 0x128   :  { %v1100_v35 = vadd.f32 %v2209_v42, %v1029_v27  ;;  %v1163_v39 = vmax.f32 %v1099_v25, 0.0  ;;  %v1129_v44 = vmax.f32 %v1065_v30, 0.0  ;;  %v1161_v45 = vmax.f32 %v1097_v31, 0.0 }
 0x129   :  { %v1066_v36 = vadd.f32 %v2209_v42, %v995_v32  ;;  %v1098_v37 = vadd.f32 %v2209_v42, %v1027_v33  ;;  %v1132_v41 = vmax.f32 %v1068_v34, 0.0 }
 0x12a   :  { %v1164_v43 = vmax.f32 %v1100_v35, 0.0  ;;  %v1954_v48 = vpop.f32.mrb[8].mxu0  ;;  %v1986_v49 = vpop.f32.mrb[8].mxu1 }
 0x12b   :  { %v1130_v46 = vmax.f32 %v1066_v36, 0.0  ;;  %v1162_v47 = vmax.f32 %v1098_v37, 0.0  ;;  %v1715_v50 = vpack.c.bf16 %v1132_v41, %v1131_v38  ;;  %v1000_v52 = vmul.f32 %v1954_v48, %v2204_v40  ;;  %v565_v54 = vpop.f32.mrb[9].mxu0  ;;  %v693_v55 = vpop.f32.mrb[9].mxu1 }
 0x12c   :  { %v1795_v51 = vpack.c.bf16 %v1164_v43, %v1163_v39  ;;  %v1032_v53 = vmul.f32 %v1986_v49, %v2204_v40  ;;  %v998_v58 = vmul.f32 %v2204_v40, %v565_v54  ;;  %v1030_v59 = vmul.f32 %v2204_v40, %v693_v55  ;;  %v1955_v60 = vpop.f32.mrb[10].mxu0  ;;  %v1987_v61 = vpop.f32.mrb[10].mxu1 }
 0x12d   :  { %v1710_v56 = vpack.c.bf16 %v1130_v46, %v1129_v44  ;;  %v1790_v57 = vpack.c.bf16 %v1162_v47, %v1161_v45  ;;  %1859 = vst [vmem:[#allocation8 + $0x18] sm:$0xff] %v1715_v50   ;;  %v1071_v62 = vadd.f32 %v2209_v42, %v1000_v52  ;;  %v1001_v0 = vmul.f32 %v1955_v60, %v2204_v40  ;;  %v568_v2 = vpop.f32.mrb[11].mxu0  ;;  %v696_v3 = vpop.f32.mrb[11].mxu1 }
 0x12e   :  { %1875 = vst [vmem:[#allocation8 + $0x98] sm:$0xff] %v1795_v51   ;;  %v1103_v63 = vadd.f32 %v2209_v42, %v1032_v53  ;;  %v1033_v1 = vmul.f32 %v1987_v61, %v2204_v40  ;;  %v1069_v4 = vadd.f32 %v2209_v42, %v998_v58  ;;  %v1101_v5 = vadd.f32 %v2209_v42, %v1030_v59 }
 0x12f   :  { %1858 = vst [vmem:[#allocation8 + $0x10] sm:$0xff] %v1710_v56   ;;  %1874 = vst [vmem:[#allocation8 + $0x90] sm:$0xff] %v1790_v57   ;;  %v999_v6 = vmul.f32 %v2204_v40, %v568_v2  ;;  %v1031_v7 = vmul.f32 %v2204_v40, %v696_v3  ;;  %v1072_v8 = vadd.f32 %v2209_v42, %v1001_v0  ;;  %v1135_v12 = vmax.f32 %v1071_v62, 0.0 }
 0x130   :  { %v1104_v9 = vadd.f32 %v2209_v42, %v1033_v1  ;;  %v1167_v13 = vmax.f32 %v1103_v63, 0.0  ;;  %v1133_v16 = vmax.f32 %v1069_v4, 0.0  ;;  %v1165_v17 = vmax.f32 %v1101_v5, 0.0 }
 0x131   :  { %v1070_v10 = vadd.f32 %v2209_v42, %v999_v6  ;;  %v1102_v11 = vadd.f32 %v2209_v42, %v1031_v7  ;;  %v1136_v14 = vmax.f32 %v1072_v8, 0.0 }
 0x132   :  { %v1168_v15 = vmax.f32 %v1104_v9, 0.0  ;;  %v1958_v20 = vpop.f32.mrb[12].mxu0  ;;  %v1990_v21 = vpop.f32.mrb[12].mxu1 }
 0x133   :  { %v1134_v18 = vmax.f32 %v1070_v10, 0.0  ;;  %v1166_v19 = vmax.f32 %v1102_v11, 0.0  ;;  %v1725_v22 = vpack.c.bf16 %v1136_v14, %v1135_v12  ;;  %v1004_v24 = vmul.f32 %v1958_v20, %v2204_v40  ;;  %v581_v26 = vpop.f32.mrb[13].mxu0  ;;  %v709_v27 = vpop.f32.mrb[13].mxu1 }
 0x134   :  { %v1805_v23 = vpack.c.bf16 %v1168_v15, %v1167_v13  ;;  %v1036_v25 = vmul.f32 %v1990_v21, %v2204_v40  ;;  %v1002_v30 = vmul.f32 %v2204_v40, %v581_v26  ;;  %v1034_v31 = vmul.f32 %v2204_v40, %v709_v27  ;;  %v1959_v32 = vpop.f32.mrb[14].mxu0  ;;  %v1991_v33 = vpop.f32.mrb[14].mxu1 }
 0x135   :  { %v1720_v28 = vpack.c.bf16 %v1134_v18, %v1133_v16  ;;  %v1800_v29 = vpack.c.bf16 %v1166_v19, %v1165_v17  ;;  %1861 = vst [vmem:[#allocation8 + $0x28] sm:$0xff] %v1725_v22   ;;  %v1075_v34 = vadd.f32 %v2209_v42, %v1004_v24  ;;  %v1005_v36 = vmul.f32 %v1959_v32, %v2204_v40  ;;  %v584_v38 = vpop.f32.mrb[15].mxu0  ;;  %v712_v39 = vpop.f32.mrb[15].mxu1 }
 0x136   :  { %1877 = vst [vmem:[#allocation8 + $0xa8] sm:$0xff] %v1805_v23   ;;  %v1107_v35 = vadd.f32 %v2209_v42, %v1036_v25  ;;  %v1037_v37 = vmul.f32 %v1991_v33, %v2204_v40  ;;  %v1073_v41 = vadd.f32 %v2209_v42, %v1002_v30  ;;  %v1105_v43 = vadd.f32 %v2209_v42, %v1034_v31 }
 0x137   :  { %1860 = vst [vmem:[#allocation8 + $0x20] sm:$0xff] %v1720_v28   ;;  %1876 = vst [vmem:[#allocation8 + $0xa0] sm:$0xff] %v1800_v29   ;;  %v1003_v44 = vmul.f32 %v2204_v40, %v584_v38  ;;  %v1035_v45 = vmul.f32 %v2204_v40, %v712_v39  ;;  %v1076_v46 = vadd.f32 %v2209_v42, %v1005_v36  ;;  %v1139_v50 = vmax.f32 %v1075_v34, 0.0 }
 0x138   :  { %v1108_v47 = vadd.f32 %v2209_v42, %v1037_v37  ;;  %v1171_v51 = vmax.f32 %v1107_v35, 0.0  ;;  %v1137_v54 = vmax.f32 %v1073_v41, 0.0  ;;  %v1169_v55 = vmax.f32 %v1105_v43, 0.0 }
 0x139   :  { %v1074_v48 = vadd.f32 %v2209_v42, %v1003_v44  ;;  %v1106_v49 = vadd.f32 %v2209_v42, %v1035_v45  ;;  %v1140_v52 = vmax.f32 %v1076_v46, 0.0 }
 0x13a   :  { %v1172_v53 = vmax.f32 %v1108_v47, 0.0  ;;  %v1962_v58 = vpop.f32.mrb[16].mxu0  ;;  %v1994_v59 = vpop.f32.mrb[16].mxu1 }
 0x13b   :  { %v1138_v56 = vmax.f32 %v1074_v48, 0.0  ;;  %v1170_v57 = vmax.f32 %v1106_v49, 0.0  ;;  %v1735_v60 = vpack.c.bf16 %v1140_v52, %v1139_v50  ;;  %v1008_v62 = vmul.f32 %v1962_v58, %v2204_v40  ;;  %v597_v0 = vpop.f32.mrb[17].mxu0  ;;  %v725_v1 = vpop.f32.mrb[17].mxu1 }
 0x13c   :  { %v1815_v61 = vpack.c.bf16 %v1172_v53, %v1171_v51  ;;  %v1040_v63 = vmul.f32 %v1994_v59, %v2204_v40  ;;  %v1006_v4 = vmul.f32 %v2204_v40, %v597_v0  ;;  %v1038_v5 = vmul.f32 %v2204_v40, %v725_v1  ;;  %v1963_v6 = vpop.f32.mrb[18].mxu0  ;;  %v1995_v7 = vpop.f32.mrb[18].mxu1 }
 0x13d   :  { %v1730_v2 = vpack.c.bf16 %v1138_v56, %v1137_v54  ;;  %v1810_v3 = vpack.c.bf16 %v1170_v57, %v1169_v55  ;;  %1863 = vst [vmem:[#allocation8 + $0x38] sm:$0xff] %v1735_v60   ;;  %v1079_v8 = vadd.f32 %v2209_v42, %v1008_v62  ;;  %v1009_v10 = vmul.f32 %v1963_v6, %v2204_v40  ;;  %v600_v12 = vpop.f32.mrb[19].mxu0  ;;  %v728_v13 = vpop.f32.mrb[19].mxu1 }
 0x13e   :  { %1879 = vst [vmem:[#allocation8 + $0xb8] sm:$0xff] %v1815_v61   ;;  %v1111_v9 = vadd.f32 %v2209_v42, %v1040_v63  ;;  %v1041_v11 = vmul.f32 %v1995_v7, %v2204_v40  ;;  %v1077_v14 = vadd.f32 %v2209_v42, %v1006_v4  ;;  %v1109_v15 = vadd.f32 %v2209_v42, %v1038_v5 }
 0x13f   :  { %1862 = vst [vmem:[#allocation8 + $0x30] sm:$0xff] %v1730_v2   ;;  %1878 = vst [vmem:[#allocation8 + $0xb0] sm:$0xff] %v1810_v3   ;;  %v1007_v16 = vmul.f32 %v2204_v40, %v600_v12  ;;  %v1039_v17 = vmul.f32 %v2204_v40, %v728_v13  ;;  %v1080_v18 = vadd.f32 %v2209_v42, %v1009_v10  ;;  %v1143_v22 = vmax.f32 %v1079_v8, 0.0 }
 0x140   :  { %v1112_v19 = vadd.f32 %v2209_v42, %v1041_v11  ;;  %v1175_v23 = vmax.f32 %v1111_v9, 0.0  ;;  %v1141_v26 = vmax.f32 %v1077_v14, 0.0  ;;  %v1173_v27 = vmax.f32 %v1109_v15, 0.0 }
 0x141   :  { %v1078_v20 = vadd.f32 %v2209_v42, %v1007_v16  ;;  %v1110_v21 = vadd.f32 %v2209_v42, %v1039_v17  ;;  %v1144_v24 = vmax.f32 %v1080_v18, 0.0 }
 0x142   :  { %v1176_v25 = vmax.f32 %v1112_v19, 0.0  ;;  %v1966_v30 = vpop.f32.mrb[20].mxu0  ;;  %v1998_v31 = vpop.f32.mrb[20].mxu1 }
 0x143   :  { %v1142_v28 = vmax.f32 %v1078_v20, 0.0  ;;  %v1174_v29 = vmax.f32 %v1110_v21, 0.0  ;;  %v1745_v32 = vpack.c.bf16 %v1144_v24, %v1143_v22  ;;  %v1012_v34 = vmul.f32 %v1966_v30, %v2204_v40  ;;  %v613_v36 = vpop.f32.mrb[21].mxu0  ;;  %v741_v37 = vpop.f32.mrb[21].mxu1 }
 0x144   :  { %v1825_v33 = vpack.c.bf16 %v1176_v25, %v1175_v23  ;;  %v1044_v35 = vmul.f32 %v1998_v31, %v2204_v40  ;;  %v1010_v41 = vmul.f32 %v2204_v40, %v613_v36  ;;  %v1042_v43 = vmul.f32 %v2204_v40, %v741_v37  ;;  %v1967_v44 = vpop.f32.mrb[22].mxu0  ;;  %v1999_v45 = vpop.f32.mrb[22].mxu1 }
 0x145   :  { %v1740_v38 = vpack.c.bf16 %v1142_v28, %v1141_v26  ;;  %v1820_v39 = vpack.c.bf16 %v1174_v29, %v1173_v27  ;;  %1865 = vst [vmem:[#allocation8 + $0x48] sm:$0xff] %v1745_v32   ;;  %v1083_v46 = vadd.f32 %v2209_v42, %v1012_v34  ;;  %v1013_v48 = vmul.f32 %v1967_v44, %v2204_v40  ;;  %v616_v50 = vpop.f32.mrb[23].mxu0  ;;  %v744_v51 = vpop.f32.mrb[23].mxu1 }
 0x146   :  { %1881 = vst [vmem:[#allocation8 + $0xc8] sm:$0xff] %v1825_v33   ;;  %v1115_v47 = vadd.f32 %v2209_v42, %v1044_v35  ;;  %v1045_v49 = vmul.f32 %v1999_v45, %v2204_v40  ;;  %v1081_v52 = vadd.f32 %v2209_v42, %v1010_v41  ;;  %v1113_v53 = vadd.f32 %v2209_v42, %v1042_v43 }
 0x147   :  { %1864 = vst [vmem:[#allocation8 + $0x40] sm:$0xff] %v1740_v38   ;;  %1880 = vst [vmem:[#allocation8 + $0xc0] sm:$0xff] %v1820_v39   ;;  %v1011_v54 = vmul.f32 %v2204_v40, %v616_v50  ;;  %v1043_v55 = vmul.f32 %v2204_v40, %v744_v51  ;;  %v1084_v56 = vadd.f32 %v2209_v42, %v1013_v48  ;;  %v1147_v60 = vmax.f32 %v1083_v46, 0.0 }
 0x148   :  { %v1116_v57 = vadd.f32 %v2209_v42, %v1045_v49  ;;  %v1179_v61 = vmax.f32 %v1115_v47, 0.0  ;;  %v1145_v0 = vmax.f32 %v1081_v52, 0.0  ;;  %v1177_v1 = vmax.f32 %v1113_v53, 0.0 }
 0x149   :  { %v1082_v58 = vadd.f32 %v2209_v42, %v1011_v54  ;;  %v1114_v59 = vadd.f32 %v2209_v42, %v1043_v55  ;;  %v1148_v62 = vmax.f32 %v1084_v56, 0.0 }
 0x14a   :  { %v1180_v63 = vmax.f32 %v1116_v57, 0.0  ;;  %v1970_v4 = vpop.f32.mrb[24].mxu0  ;;  %v2002_v5 = vpop.f32.mrb[24].mxu1 }
 0x14b   :  { %v1146_v2 = vmax.f32 %v1082_v58, 0.0  ;;  %v1178_v3 = vmax.f32 %v1114_v59, 0.0  ;;  %v1755_v6 = vpack.c.bf16 %v1148_v62, %v1147_v60  ;;  %v1016_v8 = vmul.f32 %v1970_v4, %v2204_v40  ;;  %v629_v10 = vpop.f32.mrb[25].mxu0  ;;  %v757_v11 = vpop.f32.mrb[25].mxu1 }
 0x14c   :  { %v1835_v7 = vpack.c.bf16 %v1180_v63, %v1179_v61  ;;  %v1048_v9 = vmul.f32 %v2002_v5, %v2204_v40  ;;  %v1014_v14 = vmul.f32 %v2204_v40, %v629_v10  ;;  %v1046_v15 = vmul.f32 %v2204_v40, %v757_v11  ;;  %v1971_v16 = vpop.f32.mrb[26].mxu0  ;;  %v2003_v17 = vpop.f32.mrb[26].mxu1 }
 0x14d   :  { %v1750_v12 = vpack.c.bf16 %v1146_v2, %v1145_v0  ;;  %v1830_v13 = vpack.c.bf16 %v1178_v3, %v1177_v1  ;;  %1867 = vst [vmem:[#allocation8 + $0x58] sm:$0xff] %v1755_v6   ;;  %v1087_v18 = vadd.f32 %v2209_v42, %v1016_v8  ;;  %v1017_v20 = vmul.f32 %v1971_v16, %v2204_v40  ;;  %v632_v22 = vpop.f32.mrb[27].mxu0  ;;  %v760_v23 = vpop.f32.mrb[27].mxu1 }
 0x14e   :  { %1883 = vst [vmem:[#allocation8 + $0xd8] sm:$0xff] %v1835_v7   ;;  %v1119_v19 = vadd.f32 %v2209_v42, %v1048_v9  ;;  %v1049_v21 = vmul.f32 %v2003_v17, %v2204_v40  ;;  %v1085_v24 = vadd.f32 %v2209_v42, %v1014_v14  ;;  %v1117_v25 = vadd.f32 %v2209_v42, %v1046_v15 }
 0x14f   :  { %1866 = vst [vmem:[#allocation8 + $0x50] sm:$0xff] %v1750_v12   ;;  %1882 = vst [vmem:[#allocation8 + $0xd0] sm:$0xff] %v1830_v13   ;;  %v1015_v26 = vmul.f32 %v2204_v40, %v632_v22  ;;  %v1047_v27 = vmul.f32 %v2204_v40, %v760_v23  ;;  %v1088_v28 = vadd.f32 %v2209_v42, %v1017_v20  ;;  %v1151_v32 = vmax.f32 %v1087_v18, 0.0 }
 0x150   :  { %v1120_v29 = vadd.f32 %v2209_v42, %v1049_v21  ;;  %v1183_v33 = vmax.f32 %v1119_v19, 0.0  ;;  %v1149_v36 = vmax.f32 %v1085_v24, 0.0  ;;  %v1181_v37 = vmax.f32 %v1117_v25, 0.0 }
 0x151   :  { %v1086_v30 = vadd.f32 %v2209_v42, %v1015_v26  ;;  %v1118_v31 = vadd.f32 %v2209_v42, %v1047_v27  ;;  %v1152_v34 = vmax.f32 %v1088_v28, 0.0 }
 0x152   :  { %v1184_v35 = vmax.f32 %v1120_v29, 0.0  ;;  %v1974_v41 = vpop.f32.mrb[28].mxu0  ;;  %v2006_v43 = vpop.f32.mrb[28].mxu1 }
 0x153   :  { %v1150_v38 = vmax.f32 %v1086_v30, 0.0  ;;  %v1182_v39 = vmax.f32 %v1118_v31, 0.0  ;;  %v1765_v44 = vpack.c.bf16 %v1152_v34, %v1151_v32  ;;  %v1020_v46 = vmul.f32 %v1974_v41, %v2204_v40  ;;  %v645_v48 = vpop.f32.mrb[29].mxu0  ;;  %v773_v49 = vpop.f32.mrb[29].mxu1 }
 0x154   :  { %v1845_v45 = vpack.c.bf16 %v1184_v35, %v1183_v33  ;;  %v1052_v47 = vmul.f32 %v2006_v43, %v2204_v40  ;;  %v1018_v52 = vmul.f32 %v2204_v40, %v645_v48  ;;  %v1050_v53 = vmul.f32 %v2204_v40, %v773_v49  ;;  %v1975_v54 = vpop.f32.mrb[30].mxu0  ;;  %v2007_v55 = vpop.f32.mrb[30].mxu1 }
 0x155   :  { %v1760_v50 = vpack.c.bf16 %v1150_v38, %v1149_v36  ;;  %v1840_v51 = vpack.c.bf16 %v1182_v39, %v1181_v37  ;;  %1869 = vst [vmem:[#allocation8 + $0x68] sm:$0xff] %v1765_v44   ;;  %v1091_v56 = vadd.f32 %v2209_v42, %v1020_v46  ;;  %v1021_v58 = vmul.f32 %v1975_v54, %v2204_v40  ;;  %v648_v60 = vpop.f32.mrb[31].mxu0  ;;  %v776_v61 = vpop.f32.mrb[31].mxu1 }
 0x156   :  { %1885 = vst [vmem:[#allocation8 + $0xe8] sm:$0xff] %v1845_v45   ;;  %v1123_v57 = vadd.f32 %v2209_v42, %v1052_v47  ;;  %v1053_v59 = vmul.f32 %v2007_v55, %v2204_v40  ;;  %v1089_v62 = vadd.f32 %v2209_v42, %v1018_v52  ;;  %v1121_v63 = vadd.f32 %v2209_v42, %v1050_v53 }
 0x157   :  { %1868 = vst [vmem:[#allocation8 + $0x60] sm:$0xff] %v1760_v50   ;;  %1884 = vst [vmem:[#allocation8 + $0xe0] sm:$0xff] %v1840_v51   ;;  %v1019_v0 = vmul.f32 %v2204_v40, %v648_v60  ;;  %v1051_v1 = vmul.f32 %v2204_v40, %v776_v61  ;;  %v1092_v2 = vadd.f32 %v2209_v42, %v1021_v58  ;;  %v1155_v6 = vmax.f32 %v1091_v56, 0.0 }
 0x158   :  { %v1124_v3 = vadd.f32 %v2209_v42, %v1053_v59  ;;  %v1187_v7 = vmax.f32 %v1123_v57, 0.0  ;;  %v1153_v10 = vmax.f32 %v1089_v62, 0.0  ;;  %v1185_v11 = vmax.f32 %v1121_v63, 0.0 }
 0x159   :  { %v1090_v4 = vadd.f32 %v2209_v42, %v1019_v0  ;;  %v1122_v5 = vadd.f32 %v2209_v42, %v1051_v1  ;;  %v1156_v8 = vmax.f32 %v1092_v2, 0.0 }
 0x15a   :  { %v1188_v9 = vmax.f32 %v1124_v3, 0.0 }
 0x15b   :  { %v1154_v12 = vmax.f32 %v1090_v4, 0.0  ;;  %v1186_v13 = vmax.f32 %v1122_v5, 0.0  ;;  %v1775_v14 = vpack.c.bf16 %v1156_v8, %v1155_v6 }
 0x15c   :  { %v1855_v40 = vpack.c.bf16 %v1188_v9, %v1187_v7 }
 0x15d   :  { %v1770_v15 = vpack.c.bf16 %v1154_v12, %v1153_v10  ;;  %v1850_v16 = vpack.c.bf16 %v1186_v13, %v1185_v11  ;;  %1871 = vst [vmem:[#allocation8 + $0x78] sm:$0xff] %v1775_v14  }
 0x15e   :  { %1887 = vst [vmem:[#allocation8 + $0xf8] sm:$0xff] %v1855_v40  }
 0x15f   :  { %1870 = vst [vmem:[#allocation8 + $0x70] sm:$0xff] %v1770_v15   ;;  %1886 = vst [vmem:[#allocation8 + $0xf0] sm:$0xff] %v1850_v16  }
 0x160   :  { %2124 = shalt.err (!%p2121_p6)
}
 0x161   :  { %s2125_s20 = scalar_lea.hbm %s2358_s4, 4096 }
 0x162   :  { %p2126_p7 = scmp.ne.s32.totalorder %s2358_s4, %s2125_s20  ;;  %p2129_p8 = scmp.lt.u32.totalorder %s2125_s20, %s2358_s4 }
 0x164   :  { %p2131_p9 = pnand %p2129_p8, %p2126_p7 }
 0x166   :  { %2134 = shalt.err (!%p2131_p9)
}
 0x167   :  { %1520 = dma.vmem_to_hbm [thread:$0]  %s1515_s3, 4096, %s2358_s4, [#allocation5], %s2142_s25, %s2142_s25, %s2143_s26  }
 0x168   :  { %2139 = dma.done.wait [#allocation5], 4096  }
 0x169   :  { %2140 = vsyncadd [#allocation5], 4294963200 }
 0x16a   :  { %1524 = vsyncpa [#allocation4], 1 }
 0x16b   :  { %1525 = vsyncpa [#allocation7], 1 }
 0x16c   :  { %1526 = vsyncpa [#allocation5], 1 }

</bundles_post_ra>
